<compile_context>
chip_gen: v6e
topology: v6e:2x2x1
jax: 0.10.0
libtpu: 0.0.40
codegen_flags: <defaults>
</compile_context>

<pallas_src>
import functools

import jax
import jax.numpy as jnp
from jax.experimental import pallas as pl
from jax.experimental.pallas import tpu as pltpu

_NEG_LARGE = float(jnp.finfo(jnp.float32).min)  # padded-candidate sentinel


def _mps_kernel(mean_ref, l_ref, eps_ref, score_ref, idx_ref, acc_ref,
                *, n, block, ragged):
    i = pl.program_id(0)          # candidate-tile index ("parallel" axis)
    k = pl.program_id(1)          # contraction-tile index (reduction axis, fast)

    # Fresh accumulator for every candidate tile.
    @pl.when(k == 0)
    def _():
        acc_ref[...] = jnp.zeros_like(acc_ref)

    # L is lower-triangular: tiles with k > i are all zeros -> skip them (their
    # L block index is pinned to (i, i) in the index_map, so no DMA happens for
    # those steps either; they only cost the per-step overhead).
    @pl.when(k <= i)
    def _():
        l_tile = l_ref[...]                                             # (block, block) f32
        if ragged:
            # Last contraction tile reads past the true n; zero the tail columns
            # so boundary garbage (possibly NaN) cannot leak into valid rows.
            col = k * block + jax.lax.broadcasted_iota(jnp.int32, (1, block), 1)
            l_tile = jnp.where(col < n, l_tile, 0.0)
        e_tile = eps_ref[:, pl.ds(pl.multiple_of(k * block, 128), block)]  # (S, block)
        # acc[s, c] += sum_j eps[s, j] * L[c, j]
        # (L tile untransposed; contract its second dim -- tile-local transpose
        #  rides the otherwise-idle XLU, fully hidden under the L DMA.)
        acc_ref[...] += jax.lax.dot_general(
            e_tile, l_tile,
            dimension_numbers=(((1,), (1,)), ((), ())),
            preferred_element_type=jnp.float32)

    # Finalize this candidate tile right after its last useful contraction step.
    @pl.when(k == i)
    def _():
        obj = acc_ref[...] + mean_ref[...]                               # (S, block) f32
        if ragged:
            cand = i * block + jax.lax.broadcasted_iota(jnp.int32, (1, block), 1)
            obj = jnp.where(cand < n, obj, _NEG_LARGE)                   # mask padded candidates
        tile_max = jnp.max(obj, axis=-1, keepdims=True)                  # (S, 1)
        iota = jax.lax.broadcasted_iota(jnp.int32, obj.shape, 1)         # (S, block)
        # First-occurrence argmax inside the tile; NaNs are treated as maximal
        # (approximates torch.argmax NaN propagation).
        # TODO(synk): exact global NaN semantics still depend on jnp.argmax over
        #             the per-tile maxima in the wrapper (NaN-first), which
        #             matches torch for ordered tiles.
        is_max = (obj >= tile_max) | jnp.isnan(obj)
        loc = jnp.min(jnp.where(is_max, iota, block), axis=-1, keepdims=True)  # (S, 1)
        score_ref[...] = tile_max[None]                                  # (1, S, 1)
        idx_ref[...] = (i * block + loc)[None]                           # (1, S, 1) int32


def max_posterior_sampling(X, mean, L, eps, *, block=1024):
    """Pallas-TPU MaxPosteriorSampling forward (replacement=True).

    X: (n, d) candidates, mean: (n,) posterior mean, L: (n, n) posterior
    Cholesky factor (lower-triangular), eps: (S, n) N(0,1) base samples for
    posterior.rsample. Returns (X_samp (S, d), acq_score (S, 1)).

    L is streamed once (f32, lower triangle only) -- the op is bandwidth-bound
    on L; batching more posterior samples per call (larger S) amortizes it.
    """
    S, n = eps.shape
    n_x, d = X.shape
    assert n_x == n and L.shape == (n, n) and mean.shape == (n,)

    lane = 128
    block = max(lane, (block // lane) * lane)            # multiple of 128
    block = min(block, pl.cdiv(n, lane) * lane)          # don't exceed lane-rounded n
    ni = pl.cdiv(n, block)                               # candidate tiles == contraction tiles
    n_pad = ni * block
    ragged = (n_pad != n)

    X32 = jnp.asarray(X, jnp.float32)
    mean2d = jnp.asarray(mean, jnp.float32).reshape(1, n)
    L32 = jnp.asarray(L, jnp.float32)                    # streamed as-is: no cast/pad HBM pass
    eps32 = jnp.asarray(eps, jnp.float32)
    if ragged:                                           # eps is tiny (S x n); padding is cheap
        eps32 = jnp.pad(eps32, ((0, 0), (0, n_pad - n)))

    useful_tiles = ni * (ni + 1) // 2                    # lower triangle only
    cost = pl.CostEstimate(
        flops=2 * S * useful_tiles * block * block,
        transcendentals=0,
        bytes_accessed=(useful_tiles * block * block * 4     # triangular L stream (read once)
                        + S * n_pad * 4                      # eps (resident, read once)
                        + n * 4                              # mean
                        + ni * S * (4 + 4)))                 # per-tile partial outputs

    # VMEM budget from actual tile math (double-buffered f32 L tiles dominate).
    # block=1024 -> ~9 MiB, comfortably inside v7x's 64 MiB physical VMEM.
    vmem_bytes = (2 * block * block * 4       # L tiles (double-buffered)
                  + 2 * S * n_pad * 4         # eps (resident; budget 2 buffers)
                  + 2 * block * 4             # mean tiles
                  + S * block * 4             # accumulator scratch
                  + 4 * S * (4 + 4))          # output blocks
    vmem_limit = int(vmem_bytes * 3 // 2) + 4 * 1024 * 1024

    grid_spec = pltpu.PrefetchScalarGridSpec(
        num_scalar_prefetch=0,
        grid=(ni, ni),                                       # reduction axis last
        in_specs=[
            pl.BlockSpec((1, block), lambda i, k: (0, i)),   # mean tile
            # Lower-triangular stream: for k > i the index repeats (i, i), so
            # Pallas skips the DMA for those (zero) tiles.
            pl.BlockSpec((block, block), lambda i, k: (i, jnp.minimum(k, i))),
            pl.BlockSpec((S, n_pad), lambda i, k: (0, 0)),   # eps, fully VMEM-resident
        ],
        out_specs=(
            pl.BlockSpec((1, S, 1), lambda i, k: (i, 0, 0)),  # per-tile max
            pl.BlockSpec((1, S, 1), lambda i, k: (i, 0, 0)),  # per-tile global argmax
        ),
        scratch_shapes=[pltpu.VMEM((S, block), jnp.float32)],  # rsample accumulator
    )

    kernel = functools.partial(_mps_kernel, n=n, block=block, ragged=ragged)
    tile_max, tile_idx = pl.pallas_call(
        kernel,
        out_shape=(jax.ShapeDtypeStruct((ni, S, 1), jnp.float32),
                   jax.ShapeDtypeStruct((ni, S, 1), jnp.int32)),
        grid_spec=grid_spec,
        cost_estimate=cost,
        compiler_params=pltpu.CompilerParams(
            # Candidate-tile axis carries no cross-tile state anymore (per-tile
            # partials) -> "parallel" so v7x's second TensorCore gets half the
            # rows of L; contraction axis accumulates -> "arbitrary".
            dimension_semantics=("parallel", "arbitrary"),
            vmem_limit_bytes=vmem_limit,
        ),
    )(mean2d, L32, eps32)

    # Cross-tile reduction + X row gather: O(ni*S) / O(S*d) glue, done in JAX.
    tile_max = tile_max[..., 0]                                          # (ni, S)
    tile_idx = tile_idx[..., 0]                                          # (ni, S)
    best_tile = jnp.argmax(tile_max, axis=0)                             # (S,) first-occurrence
    acq_score = jnp.take_along_axis(tile_max, best_tile[None, :], axis=0)[0][:, None]  # (S, 1)
    idcs = jnp.take_along_axis(tile_idx, best_tile[None, :], axis=0)[0]  # (S,)
    X_samp = jnp.take(X32, idcs, axis=0)                                 # (S, d)
    return X_samp, acq_score

# TODO(synk): replacement=False branch (topk + _flip_sub_unique sequential dedup) has
#             no clean vectorized Pallas equivalent; only the default replacement=True
#             path is implemented.


if __name__ == "__main__":
    # Small, deterministic problem. n is intentionally NOT a multiple of 128 and
    # block is forced to 128 so the ragged, multi-tile, lower-triangular (3x3
    # grid) path is exercised.
    n, d, S = 300, 32, 8
    key = jax.random.PRNGKey(0)
    kx, kw, keps = jax.random.split(key, 3)

    X = jax.random.normal(kx, (n, d), jnp.float32)

    # Synthetic GP posterior (deterministic "model" parameters; glue JAX, not the hot path):
    w = jax.random.normal(kw, (d,), jnp.float32) / jnp.sqrt(d)
    mean = X @ w                                                       # posterior mean (n,)
    sq = jnp.sum((X[:, None, :] - X[None, :, :]) ** 2, axis=-1)
    K = jnp.exp(-0.5 * sq / d) + 1e-3 * jnp.eye(n, dtype=jnp.float32)  # RBF cov + jitter
    L = jnp.linalg.cholesky(K)                                         # posterior Cholesky

    eps = jax.random.normal(keps, (S, n), jnp.float32)                 # rsample base samples

    X_samp, acq_score = max_posterior_sampling(X, mean, L, eps, block=128)
    jax.block_until_ready((X_samp, acq_score))

    # Plain-JAX f32 reference of the same forward pass (HIGHEST precision so the
    # reference matmul is true f32 like the kernel's accumulation).
    obj_ref = jnp.dot(eps, L.T, precision=jax.lax.Precision.HIGHEST) + mean[None, :]
    idx_ref = jnp.argmax(obj_ref, axis=-1)
    X_ref = X[idx_ref]
    score_ref = jnp.max(obj_ref, axis=-1, keepdims=True)

    assert X_samp.shape == (S, d) and acq_score.shape == (S, 1)
    assert jnp.allclose(acq_score, score_ref, atol=1e-3, rtol=1e-3)
    assert jnp.allclose(X_samp, X_ref, atol=1e-3, rtol=1e-3)

    print("KERNEL_OK")
</pallas_src>

<mosaic_0001>
module attributes {stable_mosaic.version = 11 : i64} {
  func.func @_mps_kernel(%arg0: i32, %arg1: i32, %arg2: memref<1x128xf32, #tpu.memory_space<vmem>>, %arg3: memref<128x128xf32, #tpu.memory_space<vmem>>, %arg4: memref<8x384xf32, #tpu.memory_space<vmem>>, %arg5: memref<1x8x1xf32, #tpu.memory_space<vmem>>, %arg6: memref<1x8x1xi32, #tpu.memory_space<vmem>>, %arg7: memref<8x128xf32, #tpu.memory_space<vmem>>) attributes {dimension_semantics = [#tpu.dimension_semantics<parallel>, #tpu.dimension_semantics<arbitrary>], iteration_bounds = array<i64: 3, 3>, scalar_prefetch = 0 : i64, scratch_operands = 1 : i64, tpu.core_type = #tpu.core_type<tc>, window_params = [{transform_indices = @transform_0, window_bounds = array<i64: 1, 128>}, {transform_indices = @transform_1, window_bounds = array<i64: 128, 128>}, {pipeline_mode = #tpu.pipeline_mode<synchronous>, transform_indices = @transform_2, window_bounds = array<i64: 8, 384>}, {transform_indices = @transform_3, window_bounds = array<i64: 1, 8, 1>}, {transform_indices = @transform_4, window_bounds = array<i64: 1, 8, 1>}]} {
    %c0_i32 = arith.constant 0 : i32
    %0 = arith.cmpi eq, %arg1, %c0_i32 : i32
    %1 = arith.extui %0 : i1 to i32
    %c0_i32_0 = arith.constant 0 : i32
    %2 = arith.cmpi ne, %1, %c0_i32_0 : i32
    scf.if %2 {
      %cst = arith.constant 0.000000e+00 : f32
      %9 = vector.broadcast %cst : f32 to vector<8x128xf32>
      %c0 = arith.constant 0 : index
      %c0_3 = arith.constant 0 : index
      %10 = vector.load %arg7[%c0, %c0_3] : memref<8x128xf32, #tpu.memory_space<vmem>>, vector<8x128xf32>
      tpu.vector_store %arg7[%c0, %c0_3], %9 {strides = array<i32>} : memref<8x128xf32, #tpu.memory_space<vmem>>, vector<8x128xf32>,
    } else {
    }
    %3 = arith.cmpi sle, %arg1, %arg0 : i32
    %4 = arith.extui %3 : i1 to i32
    %c0_i32_1 = arith.constant 0 : i32
    %5 = arith.cmpi ne, %4, %c0_i32_1 : i32
    scf.if %5 {
      %c0 = arith.constant 0 : index
      %c0_3 = arith.constant 0 : index
      %9 = vector.load %arg3[%c0, %c0_3] : memref<128x128xf32, #tpu.memory_space<vmem>>, vector<128x128xf32>
      %c128_i32 = arith.constant 128 : i32
      %10 = arith.muli %arg1, %c128_i32 : i32
      %11 = tpu.iota {dimensions = array<i32: 1>} : vector<1x128xi32>
      %12 = vector.broadcast %10 : i32 to vector<1x128xi32>
      %13 = arith.addi %12, %11 : vector<1x128xi32>
      %c300_i32 = arith.constant 300 : i32
      %14 = vector.broadcast %c300_i32 : i32 to vector<1x128xi32>
      %15 = arith.cmpi slt, %13, %14 : vector<1x128xi32>
      %cst = arith.constant 0.000000e+00 : f32
      %16 = vector.shape_cast %15 : vector<1x128xi1> to vector<1x128xi1>
      %17 = vector.broadcast %16 : vector<1x128xi1> to vector<128x128xi1>
      %18 = vector.broadcast %cst : f32 to vector<128x128xf32>
      %19 = arith.select %17, %9, %18 : vector<128x128xi1>, vector<128x128xf32>
      %c128_i32_4 = arith.constant 128 : i32
      %20 = arith.muli %arg1, %c128_i32_4 : i32
      %21 = tpu.assume_multiple %20, 128 : i32
      %c0_5 = arith.constant 0 : index
      %22 = arith.index_cast %21 : i32 to index
      %23 = vector.load %arg4[%c0_5, %22] : memref<8x384xf32, #tpu.memory_space<vmem>>, vector<8x128xf32>
      %c0_6 = arith.constant 0 : index
      %c0_7 = arith.constant 0 : index
      %24 = vector.load %arg7[%c0_6, %c0_7] : memref<8x128xf32, #tpu.memory_space<vmem>>, vector<8x128xf32>
      %cst_8 = arith.constant dense<0.000000e+00> : vector<8x128xf32>
      %25 = tpu.matmul %23, %19, %cst_8 {dimension_numbers = #tpu.dot_dimension_numbers<[1], [1], [0], [0], [0, 0, 1, 0], [], []>} : vector<8x128xf32>, vector<128x128xf32>, vector<8x128xf32> -> vector<8x128xf32>
      %26 = arith.addf %24, %25 : vector<8x128xf32>
      %c0_9 = arith.constant 0 : index
      %c0_10 = arith.constant 0 : index
      %27 = vector.load %arg7[%c0_9, %c0_10] : memref<8x128xf32, #tpu.memory_space<vmem>>, vector<8x128xf32>
      tpu.vector_store %arg7[%c0_9, %c0_10], %26 {strides = array<i32>} : memref<8x128xf32, #tpu.memory_space<vmem>>, vector<8x128xf32>,
    } else {
    }
    %6 = arith.cmpi eq, %arg1, %arg0 : i32
    %7 = arith.extui %6 : i1 to i32
    %c0_i32_2 = arith.constant 0 : i32
    %8 = arith.cmpi ne, %7, %c0_i32_2 : i32
    scf.if %8 {
      %c0 = arith.constant 0 : index
      %c0_3 = arith.constant 0 : index
      %9 = vector.load %arg7[%c0, %c0_3] : memref<8x128xf32, #tpu.memory_space<vmem>>, vector<8x128xf32>
      %c0_4 = arith.constant 0 : index
      %c0_5 = arith.constant 0 : index
      %10 = vector.load %arg2[%c0_4, %c0_5] : memref<1x128xf32, #tpu.memory_space<vmem>>, vector<1x128xf32>
      %11 = vector.broadcast %10 : vector<1x128xf32> to vector<8x128xf32>
      %12 = arith.addf %9, %11 : vector<8x128xf32>
      %c128_i32 = arith.constant 128 : i32
      %13 = arith.muli %arg0, %c128_i32 : i32
      %14 = tpu.iota {dimensions = array<i32: 1>} : vector<1x128xi32>
      %15 = vector.broadcast %13 : i32 to vector<1x128xi32>
      %16 = arith.addi %15, %14 : vector<1x128xi32>
      %c300_i32 = arith.constant 300 : i32
      %17 = vector.broadcast %c300_i32 : i32 to vector<1x128xi32>
      %18 = arith.cmpi slt, %16, %17 : vector<1x128xi32>
      %cst = arith.constant -3.40282347E+38 : f32
      %19 = vector.shape_cast %18 : vector<1x128xi1> to vector<1x128xi1>
      %20 = vector.broadcast %19 : vector<1x128xi1> to vector<8x128xi1>
      %21 = vector.broadcast %cst : f32 to vector<8x128xf32>
      %22 = arith.select %20, %12, %21 : vector<8x128xi1>, vector<8x128xf32>
      %cst_6 = arith.constant dense<0xFF800000> : vector<8xf32>
      %23 = vector.multi_reduction <maximumf>, %22, %cst_6 [1] : vector<8x128xf32> to vector<8xf32>
      %24 = vector.shape_cast %23 : vector<8xf32> to vector<8x1xf32>
      %25 = tpu.iota {dimensions = array<i32: 1>} : vector<8x128xi32>
      %26 = vector.broadcast %24 : vector<8x1xf32> to vector<8x128xf32>
      %27 = arith.cmpf oge, %22, %26 : vector<8x128xf32>
      %28 = arith.cmpf one, %22, %22 : vector<8x128xf32>
      %29 = arith.ori %27, %28 : vector<8x128xi1>
      %c128_i32_7 = arith.constant 128 : i32
      %30 = vector.broadcast %c128_i32_7 : i32 to vector<8x128xi32>
      %31 = arith.select %29, %25, %30 : vector<8x128xi1>, vector<8x128xi32>
      %cst_8 = arith.constant dense<2147483647> : vector<8xi32>
      %32 = vector.multi_reduction <minsi>, %31, %cst_8 [1] : vector<8x128xi32> to vector<8xi32>
      %33 = vector.shape_cast %32 : vector<8xi32> to vector<8x1xi32>
      %34 = vector.shape_cast %24 : vector<8x1xf32> to vector<1x8x1xf32>
      %c0_9 = arith.constant 0 : index
      %c0_10 = arith.constant 0 : index
      %c0_11 = arith.constant 0 : index
      %35 = vector.load %arg5[%c0_9, %c0_10, %c0_11] : memref<1x8x1xf32, #tpu.memory_space<vmem>>, vector<1x8x1xf32>
      tpu.vector_store %arg5[%c0_9, %c0_10, %c0_11], %34 {strides = array<i32>} : memref<1x8x1xf32, #tpu.memory_space<vmem>>, vector<1x8x1xf32>,
      %c128_i32_12 = arith.constant 128 : i32
      %36 = arith.muli %arg0, %c128_i32_12 : i32
      %37 = vector.broadcast %36 : i32 to vector<8x1xi32>
      %38 = arith.addi %37, %33 : vector<8x1xi32>
      %39 = vector.shape_cast %38 : vector<8x1xi32> to vector<1x8x1xi32>
      %c0_13 = arith.constant 0 : index
      %c0_14 = arith.constant 0 : index
      %c0_15 = arith.constant 0 : index
      %40 = vector.load %arg6[%c0_13, %c0_14, %c0_15] : memref<1x8x1xi32, #tpu.memory_space<vmem>>, vector<1x8x1xi32>
      tpu.vector_store %arg6[%c0_13, %c0_14, %c0_15], %39 {strides = array<i32>} : memref<1x8x1xi32, #tpu.memory_space<vmem>>, vector<1x8x1xi32>,
    } else {
    }
    return
  }
  func.func @transform_0(%arg0: i32, %arg1: i32) -> (i32, i32) {
    %c0_i32 = arith.constant 0 : i32
    %c0_i32_0 = arith.constant 0 : i32
    return %c0_i32, %arg0 : i32, i32
  }
  func.func @transform_1(%arg0: i32, %arg1: i32) -> (i32, i32) {
    %0 = arith.minsi %arg1, %arg0 : i32
    %c0_i32 = arith.constant 0 : i32
    return %arg0, %0 : i32, i32
  }
  func.func @transform_2(%arg0: i32, %arg1: i32) -> (i32, i32) {
    %c0_i32 = arith.constant 0 : i32
    %c0_i32_0 = arith.constant 0 : i32
    %c0_i32_1 = arith.constant 0 : i32
    return %c0_i32, %c0_i32_0 : i32, i32
  }
  func.func @transform_3(%arg0: i32, %arg1: i32) -> (i32, i32, i32) {
    %c0_i32 = arith.constant 0 : i32
    %c0_i32_0 = arith.constant 0 : i32
    %c0_i32_1 = arith.constant 0 : i32
    return %arg0, %c0_i32, %c0_i32_0 : i32, i32, i32
  }
  func.func @transform_4(%arg0: i32, %arg1: i32) -> (i32, i32, i32) {
    %c0_i32 = arith.constant 0 : i32
    %c0_i32_0 = arith.constant 0 : i32
    %c0_i32_1 = arith.constant 0 : i32
    return %arg0, %c0_i32, %c0_i32_0 : i32, i32, i32
  }
}

</mosaic_0001>

<bundles_post_ra>
// kernel: tpu_custom_call.1
= control target key start
LH: loop header
LB: loop body
LE: loop exit
PB: predicated region body
PF: predicated region fallthrough
CT: control target
= control target key end

     0   :  { %10 = vsyncpa [#allocation4], 0  ;;  %s1319_s0 = inlined_call_operand.hbm [shape: f32[1,300], index: 0, kind: input, shape index: {}]   ;;  %s1320_s1 = inlined_call_operand.hbm [shape: f32[300,300], index: 1, kind: input, shape index: {}]   ;;  %s1321_s2 = inlined_call_operand.hbm [shape: f32[8,384], index: 2, kind: input, shape index: {}]   ;;  %s1322_s3 = inlined_call_operand.vmem [shape: f32[3,8,1], index: 3, kind: output, shape index: {0}]   ;;  %s1323_s4 = inlined_call_operand.vmem [shape: s32[3,8,1], index: 4, kind: output, shape index: {1}]  }
   0x1   :  { %12 = vsyncpa [#allocation4 + $0x1], 0 }
   0x2   :  { %13 = vsyncpa [#allocation6], 0 }
   0x3   :  { %15 = vsyncpa [#allocation6 + $0x1], 0  ;;  %s1038_s15 = smov 0   ;;  %s1040_s16 = smov 0  }
   0x4   :  { %s1042_s17 = smov 0   ;;  %s1044_s18 = smov 0  }
   0x5   :  { %s1046_s19 = smov 0   ;;  %s1048_s20 = smov 0  }
   0x6   :  { %s1050_s21 = smov 0   ;;  %s1052_s22 = smov 0  }
   0x7   :  { %s1054_s23 = smov 0   ;;  %s1056_s24 = smov 0  }
   0x8   :  { %s1058_s25 = smov 0  }
   0x9 LB: > { %1331 = sst [smem:[#allocation11_spill]] %s986_s21  ;;  %s1324_s26 = sadd.s32 4294967295, %s1002_s25   ;;  %s1002_s25 = sphi %s1058_s25, %s21_s25   ;;  %s998_s24 = sphi %s1056_s24, %s1363_s24   ;;  %s994_s23 = sphi %s1054_s23, %s1354_s23   ;;  %s990_s22 = sphi %s1052_s22, %s1362_s22   ;;  %s986_s21 = sphi %s1050_s21, %s1353_s21   ;;  %s982_s20 = sphi %s1048_s20, %s1361_s20   ;;  %s978_s19 = sphi %s1046_s19, %s1360_s19   ;;  %s974_s18 = sphi %s1044_s18, %s1359_s18   ;;  %s970_s17 = sphi %s1042_s17, %s1358_s17   ;;  %s966_s16 = sphi %s1040_s16, %s1357_s16   ;;  %s962_s15 = sphi %s1038_s15, %s1356_s15  }
   0xa   : > { %1332 = sst [smem:[#allocation12_spill]] %s994_s23  ;;  %s30_s27 = sadd.s32 1, %s994_s23 }
   0xb   : > { %p31_p0 = scmp.ge.s32.totalorder %s30_s27, 3  ;;  %s33_s28 = sadd.s32 1, %s998_s24 }
   0xc   : > { %s40_s29 = sadd.s32 1, %s982_s20  ;;  %p47_p1 = scmp.ne.s32.totalorder %s982_s20, %s978_s19 }
   0xd   : > { %s1365_s27 = smov (%p31_p0, %s30_s27), 0  ;;  %s1367_s28 = smov (!%p31_p0, %s33_s28), %s998_s24 }
   0xe   : > { %1333 = sst [smem:[#allocation13_spill]] %s1365_s27  ;;  %p48_p2 = scmp.eq.s32.totalorder %s1002_s25, 0 }
   0xf   : > { %p53_p3 = scmp.ne.s32.totalorder %s978_s19, %s974_s18  ;;  %p35_p4 = scmp.ge.s32.totalorder %s1367_s28, 3 }
  0x10   : > { %p1104_p5 = scmp.eq.s32.totalorder %s1324_s26, 0  ;;  %p1110_p6 = por %p48_p2, %p47_p1 }
  0x11   : > { %p63_p7 = scmp.lt.s32.totalorder %s994_s23, %s998_s24  ;;  %s1369_s28 = smov (%p35_p4, %s1367_s28), 0 }
  0x12   : > { %1336 = sst [smem:[#allocation14_spill]] %s1369_s28  ;;  %p1120_p8 = por %p1104_p5, %p53_p3 }
  0x13   : > { %s72_s7 = sadd.s32 1, %s970_s17  ;;  %s37_s8 = ssub.s32 %s998_s24, %s1369_s28 }
  0x14   : > { %s1337_s6 = scalar_select %p1120_p8, 1, 0 }
  0x15   : > { %p65_p9 = scmp.lt.s32.totalorder %s1365_s27, %s1369_s28  ;;  %p38_p10 = scmp.eq.s32.totalorder %s37_s8, 0 }
  0x16   : > { %p79_p11 = scmp.ne.s32.totalorder %s970_s17, %s966_s16  ;;  %p85_p13 = scmp.ne.s32.totalorder %s966_s16, %s962_s15 }
  0x17   : > { %s1133_s9 = scalar_select %p63_p7, %s994_s23, %s998_s24 }
  0x18   : > { %s1136_s10 = scalar_select %p38_p10, %s982_s20, %s40_s29  }
  0x19   : > { %s66_s11 = scalar_select %p65_p9, %s1365_s27, %s1369_s28 }
  0x1a   : > { %1338 = sst [smem:[#allocation15_spill]] %s1136_s10  ;;  %p1142_p12 = por %p79_p11, %p48_p2 }
  0x1b   : > { %s68_s13 = ssub.s32 %s1133_s9, %s66_s11  ;;  %p623_p0 = scmp.ge.s32.totalorder %s1002_s25, 1 }
  0x1c   : > { %s1339_s12 = scalar_select %p1142_p12, 1, 0 }
  0x1d   : > { %s69_s14 = sor.u32 %s68_s13, %s37_s8  ;;  %p1152_p1 = por %p85_p13, %p1104_p5 }
  0x1e   : > { %p70_p3 = scmp.eq.s32.totalorder %s69_s14, 0  ;;  %p169_p4 = scmp.lt.s32.totalorder %s1002_s25, 10 }
  0x1f   : > { %s1340_s18 = scalar_select %p1152_p1, 1, 0 }
  0x20   : > { %s1158_s29 = scalar_select %p70_p3, %s970_s17, %s72_s7  }
  0x21   : > { %p1160_p7 = pnand %p623_p0, %p169_p4  ;;  %s1004_s28 = smov [#allocation7]  }
  0x22   : > { %1341 = sst [smem:[#allocation16_spill]] %s1158_s29  ;;  %s182_s27 = sshll.u32 %s1004_s28, 4  ;;  %s183_s27 = int_to_ptr.vmem [resolvable:$true] %s182_s27 }
  0x23   : > { %p725_p2 = pneg %p1160_p7  ;;  %s837_s15 = scalar_lea.vmem %s183_s27, 384 }
  0x24   : > { %p838_p11 = scmp.ne.s32.totalorder %s183_s27, %s837_s15  ;;  %p845_p8 = scmp.lt.s32.totalorder %s183_s27, %s183_s27 }
  0x25   : > { %p726_p9 = pnand %p725_p2, %p1104_p5  ;;  %p846_p3 = scmp.lt.s32.totalorder %s837_s15, %s837_s15 }
  0x27   : > { %p828_p10 = pneg %p726_p9  ;;  %p847_p12 = por %p846_p3, %p845_p8 }
  0x29   : > { %p840_p13 = pnand %p838_p11, %p828_p10 }
  0x2b   : > { %p841_p1 = pneg %p840_p13 }
  0x2d   : > { %p848_p0 = pnand %p847_p12, %p841_p1 }
  0x2f   : > { %851 = shalt.err (!%p848_p0)
}
  0x30   : > { %728 = dma.hbm_to_vmem [thread:$0]  (!%p726_p9), %s1321_s2, 384, %s183_s27, [#allocation6]  }
  0x31   : > { %p625_p4 = scmp.ge.s32.totalorder %s1002_s25, 9 }
  0x32   : > { %s193_s28 = sand.u32 (!%p625_p4), 1, %s982_s20   ;;  %s626_s11 = sshll.u32 (!%p625_p4), %s998_s24, 4 }
  0x33   : > { %189 = sbr.rel (%p625_p4) target bundleno = 91 (0x5b), region = 20  ;;  %s201_s23 = scalar_lea.hbm (!%p625_p4), %s1319_s0, %s626_s11 }
  0x34   : > { %s196_s15 = scalar_lea.vmem (!%p625_p4), [#allocation3], %s193_s28  ;;  %s194_s29 = scalar_lea.sflag (!%p625_p4), [#allocation4], %s193_s28 }
  0x35   : > { %s203_s10 = sshll.u32 (!%p625_p4), %s196_s15, 4  ;;  %s1005_s27 = smov (!%p625_p4), [#allocation3]   ;;  %s204_s10 = int_to_ptr.vmem [resolvable:$true] %s203_s10 }
  0x36   : > { %s864_s21 = scalar_lea.vmem (!%p625_p4), %s204_s10, 16  ;;  %s868_s7 = sshll.u32 (!%p625_p4), %s1005_s27, 4  ;;  %s869_s7 = int_to_ptr.vmem [resolvable:$false] %s868_s7 }
  0x37   : > { %p865_p8 = scmp.ne.s32.totalorder (!%p625_p4), %s204_s10, %s864_s21  ;;  %s870_s8 = scalar_lea.vmem (!%p625_p4), %s869_s7, 32 }
  0x38   : > { %p871_p2 = scmp.lt.s32.totalorder %s204_s10, %s869_s7  ;;  %p872_p9 = scmp.lt.s32.totalorder %s870_s8, %s864_s21 }
  0x39   : > { %p866_p12 = pnand %p865_p8, %p1110_p6 }
  0x3a   : > { %p873_p10 = por %p872_p9, %p871_p2 }
  0x3b   : > { %p867_p1 = pneg %p866_p12 }
  0x3d   : > { %p874_p11 = pnand %p873_p10, %p867_p1 }
  0x3f   : > { %877 = shalt.err (!%p874_p11)
}
  0x40   : > { %720 = dma.hbm_to_vmem [thread:$0]  (%p1110_p6), %s201_s23, 16, %s204_s10, %s194_s29  }
  0x41   : > { %p1343_p13 = scmp.ne.s32.totalorder %s1339_s12, 0 }
  0x42   : > { %s210_s28 = sand.u32 (%p1343_p13), 1, %s1002_s25   ;;  %s212_s13 = sand.u32 (%p1343_p13), 1, %s970_s17  }
  0x43   : > { %209 = sbr.rel (!%p1343_p13) target bundleno = 91 (0x5b), region = 28  ;;  %s627_s14 = sshll.u32 (%p1343_p13), %s212_s13, 7 }
  0x44   : > { %s218_s15 = ssub.s32 (%p1343_p13), 38, %s626_s11  ;;  %s1188_s7 = scalar_lea.sflag (%p1343_p13), [#allocation6], %s210_s28 }
  0x45   : > { %p219_p3 = scmp.lt.s32.totalorder (%p1343_p13), %s218_s15, 16  ;;  %s214_s5 = scalar_lea.vmem (%p1343_p13), [#allocation5], %s627_s14 }
  0x48   : > { %s1371_s15 = smov (!%p219_p3, %s218_s15), 16 }
  0x49   : > { %s1185_s27 = sshll.u32 %s1371_s15, 7 }
  0x4a   : > { %s223_s21 = ssub.s32 2048, %s1185_s27 }
  0x4b   : > { %224 = vsyncadd %s1188_s7, %s223_s21  ;;  %p630_p6 = scmp.ne.s32.totalorder %s1185_s27, 0  ;;  %s717_s23 = smul.u32 48, %s998_s24 }
  0x4c   : > { %s231_s10 = sshll.u32 %s214_s5, 4  ;;  %s1006_s14 = smov [#allocation5]   ;;  %s232_s10 = int_to_ptr.vmem [resolvable:$true] %s231_s10 }
  0x4d   : > { %s227_s12 = sadd.s32 %s717_s23, %s1133_s9  ;;  %s890_s28 = scalar_lea.vmem %s232_s10, %s1185_s27 }
  0x4e   : > { %s632_s29 = sshll.u32 %s227_s12, 7  ;;  %p891_p0 = scmp.ne.s32.totalorder %s232_s10, %s890_s28 }
  0x4f   : > { %s229_s13 = scalar_lea.hbm %s1320_s1, %s632_s29  ;;  %s894_s15 = sshll.u32 %s1006_s14, 4  ;;  %s895_s15 = int_to_ptr.vmem [resolvable:$false] %s894_s15 }
  0x50   : > { %p892_p4 = pnand %p891_p0, %p630_p6  ;;  %s896_s21 = scalar_lea.vmem %s895_s15, 4096 }
  0x51   : > { %p897_p12 = scmp.lt.s32.totalorder %s232_s10, %s895_s15  ;;  %p898_p1 = scmp.lt.s32.totalorder %s896_s21, %s890_s28 }
  0x52   : > { %p893_p8 = pneg %p892_p4 }
  0x53   : > { %p899_p2 = por %p898_p1, %p897_p12 }
  0x55   : > { %p900_p9 = pnand %p899_p2, %p893_p8 }
  0x57   : > { %903 = shalt.err (!%p900_p9)
}
  0x58   : > { %s1007_s9 = smov 384   ;;  %s1008_s5 = smov 128  }
  0x59   : > { %s1009_s23 = smov 8  }
  0x5a   : > { %237 = dma.hbm_to_vmem [thread:$0]  (%p630_p6), %s229_s13, %s1185_s27, %s232_s10, %s1188_s7, %s1007_s9, %s1008_s5, %s1009_s23  }
  0x5b PF: > { %243 = sbr.rel (%p1160_p7) target bundleno = 850 (0x352), region = 32  ;;  %s245_s12 = sand.u32 (!%p1160_p7), 1, %s978_s19  }
  0x5c   : > { %s246_s29 = scalar_lea.sflag (!%p1160_p7), [#allocation4], %s245_s12  ;;  %s1207_s11 = scalar_lea.vmem (!%p1160_p7), [#allocation3], %s245_s12 }
  0x5d   : > { %p1344_p10 = scmp.ne.s32.totalorder (!%p1160_p7), %s1337_s6, 0 }
  0x60   : > { %949 = dma.done.wait (%p1344_p10), %s246_s29, 16  }
  0x61   : > { %951 = vsyncadd (%p1344_p10), %s246_s29, 4294967280  ;;  %s1345_s8 = sadd.s32 4294967295, %s1002_s25   ;;  %s255_s7 = sand.u32 1, %s966_s16  }
  0x62   : > { %s253_s27 = sand.u32 1, %s1345_s8   ;;  %s636_s10 = sshll.u32 %s255_s7, 7 }
  0x63   : > { %s254_s26 = scalar_lea.sflag [#allocation6], %s253_s27  ;;  %s1216_s13 = scalar_lea.vmem [#allocation5], %s636_s10 }
  0x64   : > { %p1346_p7 = scmp.ne.s32.totalorder %s1340_s18, 0 }
  0x66   : > { %953 = dma.done.wait (%p1346_p7), %s254_s26, 2048  }
  0x67   : > { %955 = vsyncadd (%p1346_p7), %s254_s26, 4294965248 }
  0x68   : > { %957 = dma.done.wait (%p1104_p5), [#allocation6], 384  }
  0x69   : > { %959 = vsyncadd (%p1104_p5), [#allocation6], 4294966912  ;;  %p300_p11 = scmp.lt.s32.totalorder %s990_s22, 2  ;;  %s1347_s23 = sld [smem:[#allocation11_spill]] }
  0x6b   : > { %s301_s6 = scalar_select %p300_p11, %s990_s22, 2 }
  0x6d   : > { %s638_s28 = sshll.u32 %s301_s6, 3 }
  0x6e   : > { %s1231_s21 = scalar_lea.vmem %s1322_s3, %s638_s28  ;;  %s1236_s18 = scalar_lea.vmem %s1323_s4, %s638_s28 }
  0x6f   : > { %p640_p13 = scmp.ne.s32.totalorder %s1347_s23, 0 }
  0x71   : > { %311 = sbr.rel (%p640_p13) target bundleno = 120 (0x78), region = 48 }
  0x76   : > { %v1010_v0 = vmov 0.0  }
  0x77   : > { %312 = vst [vmem:[#allocation2] sm:$0xff] %v1010_v0 }
  0x78 PF: > { %s1348_s30 = sld [smem:[#allocation11_spill]] }
  0x7e   : > { %p641_p5 = scmp.gt.s32.totalorder %s1348_s30, %s990_s22 }
  0x7f   : > { %s1349_s12 = sld [smem:[#allocation11_spill]] (!%p641_p5) }
  0x80   : > { %316 = sbr.rel (%p641_p5) target bundleno = 399 (0x18f), region = 52 }
  0x85   : > { %s642_s29 = sshll.u32 %s1349_s12, 7  ;;  %v334_v1 = vlaneseq  ;;  %v1011_v2 = vmov 0.0   ;;  %vm1012_vm0 = vmmov 0   ;;  %v332_v5 = vld [vmem:[%s1216_s13 + $0x78] sm:$0xff]  ;;  %v331_v7 = vld [vmem:[%s1216_s13 + $0x70] sm:$0xff]  ;;  %v330_v8 = vld [vmem:[%s1216_s13 + $0x68] sm:$0xff] }
  0x86   : > { %682 = vmatprep.subr.mxu0 %v1011_v2  ;;  %v336_v3 = vstv %s642_s29  ;;  %714 = vmatprep.mubr.msk.f32.mxu0 %vm1012_vm0, %v1011_v2  ;;  %v329_v9 = vld [vmem:[%s1216_s13 + $0x60] sm:$0xff]  ;;  %v328_v10 = vld [vmem:[%s1216_s13 + $0x58] sm:$0xff]  ;;  %v327_v11 = vld [vmem:[%s1216_s13 + $0x50] sm:$0xff]  ;;  %s357_s8 = sshra.s32 %s642_s29, 7 }
  0x87   : > { %v335_v4 = vand.u32 127, %v334_v1  ;;  %v326_v12 = vld [vmem:[%s1216_s13 + $0x48] sm:$0xff]  ;;  %v325_v13 = vld [vmem:[%s1216_s13 + $0x40] sm:$0xff]  ;;  %v324_v14 = vld [vmem:[%s1216_s13 + $0x38] sm:$0xff]  ;;  %s643_s27 = sshll.u32 %s357_s8, 3 }
  0x88   : > { %v323_v15 = vld [vmem:[%s1216_s13 + $0x30] sm:$0xff]  ;;  %v322_v16 = vld [vmem:[%s1216_s13 + $0x28] sm:$0xff]  ;;  %v321_v17 = vld [vmem:[%s1216_s13 + $0x20] sm:$0xff]  ;;  %s360_s7 = scalar_lea.vmem [#allocation7], %s643_s27 }
  0x89   : > { %v337_v6 = vadd.s32 %v336_v3, %v335_v4  ;;  %v320_v18 = vld [vmem:[%s1216_s13 + $0x18] sm:$0xff]  ;;  %v319_v19 = vld [vmem:[%s1216_s13 + $0x10] sm:$0xff]  ;;  %v318_v20 = vld [vmem:[%s1216_s13 + $0x8] sm:$0xff] }
  0x8a   : > { %v317_v21 = vld [vmem:[%s1216_s13] sm:$0xff]  ;;  %v361_v22 = vld [vmem:[%s360_s7] sm:$0xff] }
  0x8b   : > { %vm338_vm1 = vcmp.lt.s32.totalorder %v337_v6, 300  ;;  %v362_v23 = vld [vmem:[#allocation2] sm:$0xff] }
  0x8c   : > { %683 = vmatpush3.xpose.msk.msra.mxu0 %vm338_vm1, %v332_v5 }
  0x8d   : > { %684 = vmatprep.subr.mxu0 %v1011_v2 }
  0x90   : > { %685 = vmatpush3.xpose.msk.msra.mxu0 %vm338_vm1, %v331_v7 }
  0x91   : > { %686 = vmatprep.subr.mxu0 %v1011_v2 }
  0x94   : > { %687 = vmatpush3.xpose.msk.msra.mxu0 %vm338_vm1, %v330_v8 }
  0x95   : > { %688 = vmatprep.subr.mxu0 %v1011_v2 }
  0x98   : > { %689 = vmatpush3.xpose.msk.msra.mxu0 %vm338_vm1, %v329_v9 }
  0x99   : > { %690 = vmatprep.subr.mxu0 %v1011_v2 }
  0x9c   : > { %691 = vmatpush3.xpose.msk.msra.mxu0 %vm338_vm1, %v328_v10 }
  0x9d   : > { %692 = vmatprep.subr.mxu0 %v1011_v2 }
  0xa0   : > { %693 = vmatpush3.xpose.msk.msra.mxu0 %vm338_vm1, %v327_v11 }
  0xa1   : > { %694 = vmatprep.subr.mxu0 %v1011_v2 }
  0xa4   : > { %695 = vmatpush3.xpose.msk.msra.mxu0 %vm338_vm1, %v326_v12 }
  0xa5   : > { %696 = vmatprep.subr.mxu0 %v1011_v2 }
  0xa8   : > { %697 = vmatpush3.xpose.msk.msra.mxu0 %vm338_vm1, %v325_v13 }
  0xa9   : > { %698 = vmatprep.subr.mxu0 %v1011_v2 }
  0xac   : > { %699 = vmatpush3.xpose.msk.msra.mxu0 %vm338_vm1, %v324_v14 }
  0xad   : > { %700 = vmatprep.subr.mxu0 %v1011_v2 }
  0xb0   : > { %701 = vmatpush3.xpose.msk.msra.mxu0 %vm338_vm1, %v323_v15 }
  0xb1   : > { %702 = vmatprep.subr.mxu0 %v1011_v2 }
  0xb4   : > { %703 = vmatpush3.xpose.msk.msra.mxu0 %vm338_vm1, %v322_v16 }
  0xb5   : > { %704 = vmatprep.subr.mxu0 %v1011_v2 }
  0xb8   : > { %705 = vmatpush3.xpose.msk.msra.mxu0 %vm338_vm1, %v321_v17 }
  0xb9   : > { %706 = vmatprep.subr.mxu0 %v1011_v2 }
  0xbc   : > { %707 = vmatpush3.xpose.msk.msra.mxu0 %vm338_vm1, %v320_v18 }
  0xbd   : > { %708 = vmatprep.subr.mxu0 %v1011_v2 }
  0xc0   : > { %709 = vmatpush3.xpose.msk.msra.mxu0 %vm338_vm1, %v319_v19 }
  0xc1   : > { %710 = vmatprep.subr.mxu0 %v1011_v2 }
  0xc4   : > { %711 = vmatpush3.xpose.msk.msra.mxu0 %vm338_vm1, %v318_v20 }
  0xc5   : > { %712 = vmatprep.subr.mxu0 %v1011_v2 }
  0xc8   : > { %713 = vmatpush3.xpose.msk.msra.mxu0 %vm338_vm1, %v317_v21 }
  0xcb   : > { %715 = vmatmul.mubr.f32.vlgmr.msra.gmra.mxu0 %v361_v22 }
 0x18b   : > { %v429_v24 = vpop.f32.mrf.mxu0 }
 0x18c   : > { %v433_v25 = vadd.f32 %v429_v24, %v362_v23 }
 0x18d   : > { %v716_v26 = vpop.f32.mrf.mxu0 }
 0x18e   : > { %434 = vst [vmem:[#allocation2] sm:$0xff] %v433_v25 }
 0x18f PF: > { %s1350_s10 = sld [smem:[#allocation11_spill]] }
 0x195   : > { %p660_p3 = scmp.ne.s32.totalorder %s1350_s10, %s990_s22 }
 0x196   : > { %s662_s26 = sshll.u32 (!%p660_p3), %s990_s22, 7 }
 0x197   : > { %438 = sbr.rel (%p660_p3) target bundleno = 850 (0x352), region = 56 }
 0x19c   : > { %v439_v27 = vld [vmem:[#allocation2] sm:$0xff]  ;;  %v449_v29 = vlaneseq  ;;  %v451_v30 = vstv %s662_s26  ;;  %vm477_vm3 = vcmask 7168  }
 0x19d   : > { %v661_v28 = vld [vmem:[%s1207_s11] ss:$0 sm:$0xff] }
 0x19e   : > { %v450_v31 = vand.u32 127, %v449_v29  ;;  %v447_v32 = vadd.f32 %v661_v28, %v439_v27 }
 0x1a0   : > { %v452_v33 = vadd.s32 %v451_v30, %v450_v31 }
 0x1a2   : > { %vm453_vm2 = vcmp.lt.s32.totalorder %v452_v33, 300 }
 0x1a3   : > { %v456_v34 = vsel %vm453_vm2, %v447_v32, -3.4028235e+38 }
 0x1a4   : > { %457 = vmax.xlane.f32.xlu0 %v456_v34  ;;  %vm460_vm4 = vcmp.ne.f32.partialorder %v456_v34, %v456_v34 }
 0x22d   : > { %v458_v35 = vpop.xlane.xlu0 %457 }
 0x22e   : > { %vm459_vm5 = vcmp.ge.f32.partialorder %v456_v34, %v458_v35  ;;  %478 = vst.msk [vmem:[%s1231_s21] sm:$0xff] %vm477_vm3, %v458_v35 }
 0x22f   : > { %vm461_vm6 = vmor %vm459_vm5, %vm460_vm4 }
 0x230   : > { %v462_v36 = vsel %vm461_vm6, %v450_v31, 128 }
 0x231   : > { %v464_v37 = vshra.s32 %v462_v36, 16  ;;  %v463_v39 = vand.u32 65535, %v462_v36 }
 0x233   : > { %v466_v38 = vcvt.s32.f32 %v464_v37  ;;  %v465_v41 = vcvt.s32.f32 %v463_v39 }
 0x235   : > { %467 = vmin.xlane.f32.xlu0 %v466_v38 }
 0x2be   : > { %v468_v40 = vpop.xlane.xlu0 %467 }
 0x2bf   : > { %vm469_vm7 = vcmp.eq.f32.partialorder %v466_v38, %v468_v40  ;;  %v474_v43 = vcvt.f32.s32 %v468_v40 }
 0x2c0   : > { %v470_v42 = vsel %vm469_vm7, %v465_v41, inf }
 0x2c1   : > { %471 = vmin.xlane.f32.xlu1 %v470_v42  ;;  %v475_v45 = vshll.u32 %v474_v43, 16 }
 0x34a   : > { %v472_v44 = vpop.xlane.xlu1 %471 }
 0x34b   : > { %v473_v46 = vcvt.f32.s32 %v472_v44 }
 0x34d   : > { %v476_v47 = vadd.s32 %v475_v45, %v473_v46 }
 0x34f   : > { %v479_v48 = vadd.s32 %v476_v47, %v451_v30 }
 0x351   : > { %480 = vst.msk [vmem:[%s1236_s18] sm:$0xff] %vm477_vm3, %v479_v48 }
 0x352 PF: > { %s21_s25 = sadd.s32 1, %s1002_s25   ;;  %s1351_s22 = sld [smem:[#allocation16_spill]] }
 0x353   : > { %p18_p6 = scmp.ge.s32.totalorder %s21_s25, 11   ;;  %s1352_s11 = sld [smem:[#allocation15_spill]] }
 0x354   : > { %s1353_s21 = sld [smem:[#allocation12_spill]]  ;;  %s1356_s15 = smov %s966_s16 }
 0x355   : > { %s1354_s23 = sld [smem:[#allocation13_spill]]  ;;  %s1357_s16 = smov %s970_s17 }
 0x356   : > { %s1355_s13 = sld [smem:[#allocation14_spill]]  ;;  %s1359_s18 = smov %s978_s19 }
 0x357   : > { %s1360_s19 = smov %s982_s20 }
 0x358   : > { %s1358_s17 = smov %s1351_s22  ;;  %s1362_s22 = smov %s998_s24 }
 0x359   : > { %s1361_s20 = smov %s1352_s11  ;;  %20 = sbr.rel (!%p18_p6) target bundleno = 9 (0x9), region = 114 }
 0x35c   : > { %s1363_s24 = smov %s1355_s13 }
 0x35e   :  { %514 = vsyncpa [#allocation4], 1 }
 0x35f   :  { %516 = vsyncpa [#allocation4 + $0x1], 1 }
 0x360   :  { %517 = vsyncpa [#allocation6], 1 }
 0x361   :  { %519 = vsyncpa [#allocation6 + $0x1], 1 }

</bundles_post_ra>
